<compile_context>
chip_gen: v5e
topology: v5e:2x2
jax: 0.10.0
libtpu: 0.0.40
codegen_flags: <defaults>
</compile_context>

<pallas_src>
import jax
import jax.numpy as jnp
from jax import lax
from jax.experimental import pallas as pl
from jax.experimental.pallas import tpu as pltpu


def _round_up(x, m):
    return (x + m - 1) // m * m


def _mfnet_kernel(idx_ref, u_tab_ref, i_tab_ref, out_ref):
    # Shapes seen by the kernel:
    #   idx_ref   : (1, 2, TB) int32  -- row 0 = user ids, row 1 = item ids
    #   u_tab_ref : (Fp, Up)   f32    -- bias-folded, transposed, padded, resident
    #   i_tab_ref : (Fp, Ip)   f32
    #   out_ref   : (1, 1, TB) f32    -- lane-dense scores for this tile
    tb = out_ref.shape[-1]
    n_users_p = u_tab_ref.shape[-1]
    n_items_p = i_tab_ref.shape[-1]

    idx = idx_ref[0]                      # (2, TB) int32, batch on lanes
    u_idx = idx[0:1, :]                   # (1, TB)
    i_idx = idx[1:2, :]                   # (1, TB)

    # One-hot row selection (transposed so batch stays on lanes): (rows, TB).
    oh_u = (lax.broadcasted_iota(jnp.int32, (n_users_p, tb), 0) == u_idx
            ).astype(jnp.float32)
    oh_i = (lax.broadcasted_iota(jnp.int32, (n_items_p, tb), 0) == i_idx
            ).astype(jnp.float32)

    # MXU gather: (Fp, rows) @ (rows, TB) -> (Fp, TB) gathered rows.
    ug = jnp.dot(u_tab_ref[...], oh_u, preferred_element_type=jnp.float32)
    ig = jnp.dot(i_tab_ref[...], oh_i, preferred_element_type=jnp.float32)

    # Fused vecdot + both biases (extra table columns): VPU multiply over the
    # full 128 lanes, XLU sublane reduce -> lane-dense (1, TB) result.
    out_ref[0] = jnp.sum(ug * ig, axis=0, keepdims=True)


def mfnet_forward(user, item, u_bias, i_bias, u_embed, i_embed):
    """Pallas MFNet forward. user/item: int (B,). Returns f32 with user's shape."""
    user_shape = user.shape
    user = user.reshape(-1)
    item = item.reshape(-1)
    B = user.shape[0]
    n_users, n_feats = u_embed.shape
    n_items = i_embed.shape[0]

    # Padded, bias-folded, transposed tables:
    #   [u_embed | u_bias | 1] . [i_embed | 1 | i_bias] = u.i + u_bias + i_bias
    Fp = _round_up(n_feats + 2, 8)
    Up = _round_up(n_users, 128)
    Ip = _round_up(n_items, 128)

    u_tab = jnp.zeros((Fp, Up), jnp.float32)
    u_tab = u_tab.at[:n_feats, :n_users].set(u_embed.astype(jnp.float32).T)
    u_tab = u_tab.at[n_feats, :n_users].set(u_bias.reshape(-1).astype(jnp.float32))
    u_tab = u_tab.at[n_feats + 1, :n_users].set(1.0)

    i_tab = jnp.zeros((Fp, Ip), jnp.float32)
    i_tab = i_tab.at[:n_feats, :n_items].set(i_embed.astype(jnp.float32).T)
    i_tab = i_tab.at[n_feats, :n_items].set(1.0)
    i_tab = i_tab.at[n_feats + 1, :n_items].set(i_bias.reshape(-1).astype(jnp.float32))

    # Batch tiling: TB examples per grid step, batch on the lane axis.
    TB = min(512, _round_up(max(B, 1), 128))
    Bp = _round_up(max(B, 1), TB)
    G = Bp // TB

    # Single packed index stream: (G, 2, TB); pad tail with index 0 (valid row).
    idx = jnp.zeros((2, Bp), jnp.int32)
    idx = idx.at[0, :B].set(user.astype(jnp.int32))
    idx = idx.at[1, :B].set(item.astype(jnp.int32))
    idx = idx.reshape(2, G, TB).transpose(1, 0, 2)            # (G, 2, TB)

    grid_spec = pltpu.PrefetchScalarGridSpec(
        num_scalar_prefetch=0,
        grid=(G,),
        in_specs=[
            pl.BlockSpec((1, 2, TB), lambda g: (g, 0, 0)),    # packed ids tile
            pl.BlockSpec((Fp, Up), lambda g: (0, 0)),         # user table (resident)
            pl.BlockSpec((Fp, Ip), lambda g: (0, 0)),         # item table (resident)
        ],
        out_specs=pl.BlockSpec((1, 1, TB), lambda g: (g, 0, 0)),
    )

    # Leave headroom above the default scoped-VMEM limit when tables grow.
    table_bytes = 4 * Fp * (Up + Ip)
    vmem_limit = int(min(128 << 20, max(32 << 20, 2 * table_bytes + (8 << 20))))

    out = pl.pallas_call(
        _mfnet_kernel,
        out_shape=jax.ShapeDtypeStruct((G, 1, TB), jnp.float32),
        grid_spec=grid_spec,
        compiler_params=pltpu.CompilerParams(
            dimension_semantics=("parallel",),                # v7x: 2 TCs share tiles
            vmem_limit_bytes=vmem_limit),
    )(idx, u_tab, i_tab)

    return out.reshape(-1)[:B].reshape(user_shape)


def init_mfnet_params(key, n_users, n_items, n_feats):
    """Deterministic init mirroring MFNet.__init__:
       N(0,1) * 0.05 for embeddings; (N(0,1) * 0.05)**2 for biases."""
    k1, k2, k3, k4 = jax.random.split(key, 4)
    u_bias = jnp.square(jax.random.normal(k1, (n_users, 1), jnp.float32) * 0.05)
    i_bias = jnp.square(jax.random.normal(k2, (n_items, 1), jnp.float32) * 0.05)
    u_embed = jax.random.normal(k3, (n_users, n_feats), jnp.float32) * 0.05
    i_embed = jax.random.normal(k4, (n_items, n_feats), jnp.float32) * 0.05
    return u_bias, i_bias, u_embed, i_embed


def _reference(user, item, u_bias, i_bias, u_embed, i_embed):
    return (u_bias[user, 0] + i_bias[item, 0]
            + jnp.sum(u_embed[user] * i_embed[item], axis=-1))


if __name__ == "__main__":
    n_users, n_items, n_feats = 32, 48, 32
    batch = 8

    key = jax.random.PRNGKey(0)
    kp, ku, ki = jax.random.split(key, 3)
    u_bias, i_bias, u_embed, i_embed = init_mfnet_params(kp, n_users, n_items, n_feats)

    user = jax.random.randint(ku, (batch,), 0, n_users, dtype=jnp.int32)
    item = jax.random.randint(ki, (batch,), 0, n_items, dtype=jnp.int32)

    score = mfnet_forward(user, item, u_bias, i_bias, u_embed, i_embed)
    score = jax.block_until_ready(score)

    ref = _reference(user, item, u_bias, i_bias, u_embed, i_embed)
    assert score.shape == user.shape
    assert jnp.allclose(score, ref, atol=1e-5, rtol=1e-5), (score, ref)

    # Second check: batch large enough to exercise multiple grid tiles (G > 1)
    # and a non-multiple-of-128 tail.
    ku2, ki2 = jax.random.split(jax.random.PRNGKey(1), 2)
    user2 = jax.random.randint(ku2, (1000,), 0, n_users, dtype=jnp.int32)
    item2 = jax.random.randint(ki2, (1000,), 0, n_items, dtype=jnp.int32)
    score2 = jax.block_until_ready(
        mfnet_forward(user2, item2, u_bias, i_bias, u_embed, i_embed))
    ref2 = _reference(user2, item2, u_bias, i_bias, u_embed, i_embed)
    assert score2.shape == user2.shape
    assert jnp.allclose(score2, ref2, atol=1e-5, rtol=1e-5)

    print("KERNEL_OK")
</pallas_src>

<mosaic_0001>
module attributes {stable_mosaic.version = 11 : i64} {
  func.func @_mfnet_kernel(%arg0: i32, %arg1: memref<1x2x128xi32, #tpu.memory_space<vmem>>, %arg2: memref<40x128xf32, #tpu.memory_space<vmem>>, %arg3: memref<40x128xf32, #tpu.memory_space<vmem>>, %arg4: memref<1x1x128xf32, #tpu.memory_space<vmem>>) attributes {dimension_semantics = [#tpu.dimension_semantics<parallel>], iteration_bounds = array<i64: 1>, scalar_prefetch = 0 : i64, scratch_operands = 0 : i64, tpu.core_type = #tpu.core_type<tc>, window_params = [{transform_indices = @transform_0, window_bounds = array<i64: 1, 2, 128>}, {pipeline_mode = #tpu.pipeline_mode<synchronous>, transform_indices = @transform_1, window_bounds = array<i64: 40, 128>}, {pipeline_mode = #tpu.pipeline_mode<synchronous>, transform_indices = @transform_2, window_bounds = array<i64: 40, 128>}, {transform_indices = @transform_3, window_bounds = array<i64: 1, 1, 128>}]} {
    %c0 = arith.constant 0 : index
    %c0_0 = arith.constant 0 : index
    %c0_1 = arith.constant 0 : index
    %0 = vector.load %arg1[%c0, %c0_0, %c0_1] : memref<1x2x128xi32, #tpu.memory_space<vmem>>, vector<1x2x128xi32>
    %1 = vector.shape_cast %0 : vector<1x2x128xi32> to vector<2x128xi32>
    %2 = vector.extract_strided_slice %1 {offsets = [0, 0], sizes = [1, 128], strides = [1, 1]} : vector<2x128xi32> to vector<1x128xi32>
    %3 = vector.extract_strided_slice %1 {offsets = [1, 0], sizes = [1, 128], strides = [1, 1]} : vector<2x128xi32> to vector<1x128xi32>
    %4 = tpu.iota {dimensions = array<i32: 0>} : vector<128x128xi32>
    %5 = vector.broadcast %2 : vector<1x128xi32> to vector<128x128xi32>
    %6 = arith.cmpi eq, %4, %5 : vector<128x128xi32>
    %7 = arith.extui %6 : vector<128x128xi1> to vector<128x128xi32>
    %8 = arith.sitofp %7 : vector<128x128xi32> to vector<128x128xf32>
    %9 = tpu.iota {dimensions = array<i32: 0>} : vector<128x128xi32>
    %10 = vector.broadcast %3 : vector<1x128xi32> to vector<128x128xi32>
    %11 = arith.cmpi eq, %9, %10 : vector<128x128xi32>
    %12 = arith.extui %11 : vector<128x128xi1> to vector<128x128xi32>
    %13 = arith.sitofp %12 : vector<128x128xi32> to vector<128x128xf32>
    %c0_2 = arith.constant 0 : index
    %c0_3 = arith.constant 0 : index
    %14 = vector.load %arg2[%c0_2, %c0_3] : memref<40x128xf32, #tpu.memory_space<vmem>>, vector<40x128xf32>
    %cst = arith.constant dense<0.000000e+00> : vector<40x128xf32>
    %15 = tpu.matmul %14, %8, %cst {dimension_numbers = #tpu.dot_dimension_numbers<[1], [0], [0], [1], [0, 0, 1, 1], [], []>} : vector<40x128xf32>, vector<128x128xf32>, vector<40x128xf32> -> vector<40x128xf32>
    %c0_4 = arith.constant 0 : index
    %c0_5 = arith.constant 0 : index
    %16 = vector.load %arg3[%c0_4, %c0_5] : memref<40x128xf32, #tpu.memory_space<vmem>>, vector<40x128xf32>
    %cst_6 = arith.constant dense<0.000000e+00> : vector<40x128xf32>
    %17 = tpu.matmul %16, %13, %cst_6 {dimension_numbers = #tpu.dot_dimension_numbers<[1], [0], [0], [1], [0, 0, 1, 1], [], []>} : vector<40x128xf32>, vector<128x128xf32>, vector<40x128xf32> -> vector<40x128xf32>
    %18 = arith.mulf %15, %17 : vector<40x128xf32>
    %cst_7 = arith.constant dense<0.000000e+00> : vector<128xf32>
    %19 = vector.multi_reduction <add>, %18, %cst_7 [0] : vector<40x128xf32> to vector<128xf32>
    %20 = vector.shape_cast %19 : vector<128xf32> to vector<1x128xf32>
    %c0_8 = arith.constant 0 : index
    %c0_9 = arith.constant 0 : index
    %c0_10 = arith.constant 0 : index
    %21 = vector.load %arg4[%c0_8, %c0_9, %c0_10] : memref<1x1x128xf32, #tpu.memory_space<vmem>>, vector<1x1x128xf32>
    %22 = vector.shape_cast %21 : vector<1x1x128xf32> to vector<1x128xf32>
    %23 = vector.shape_cast %20 : vector<1x128xf32> to vector<1x1x128xf32>
    tpu.vector_store %arg4[%c0_8, %c0_9, %c0_10], %23 {strides = array<i32>} : memref<1x1x128xf32, #tpu.memory_space<vmem>>, vector<1x1x128xf32>,
    return
  }
  func.func @transform_0(%arg0: i32) -> (i32, i32, i32) {
    %c0_i32 = arith.constant 0 : i32
    %c0_i32_0 = arith.constant 0 : i32
    %c0_i32_1 = arith.constant 0 : i32
    return %arg0, %c0_i32, %c0_i32_0 : i32, i32, i32
  }
  func.func @transform_1(%arg0: i32) -> (i32, i32) {
    %c0_i32 = arith.constant 0 : i32
    %c0_i32_0 = arith.constant 0 : i32
    %c0_i32_1 = arith.constant 0 : i32
    return %c0_i32, %c0_i32_0 : i32, i32
  }
  func.func @transform_2(%arg0: i32) -> (i32, i32) {
    %c0_i32 = arith.constant 0 : i32
    %c0_i32_0 = arith.constant 0 : i32
    %c0_i32_1 = arith.constant 0 : i32
    return %c0_i32, %c0_i32_0 : i32, i32
  }
  func.func @transform_3(%arg0: i32) -> (i32, i32, i32) {
    %c0_i32 = arith.constant 0 : i32
    %c0_i32_0 = arith.constant 0 : i32
    %c0_i32_1 = arith.constant 0 : i32
    return %arg0, %c0_i32, %c0_i32_0 : i32, i32, i32
  }
}

</mosaic_0001>

<bundles_post_ra>
// kernel: tpu_custom_call.1
= control target key start
LH: loop header
LB: loop body
LE: loop exit
PB: predicated region body
PF: predicated region fallthrough
CT: control target
= control target key end

     0   :  { %8 = vsyncpa [#allocation3], 0  ;;  %s647_s0 = inlined_call_operand.hbm [shape: s32[1,2,128], index: 0, kind: input, shape index: {}]   ;;  %s648_s1 = inlined_call_operand.hbm [shape: f32[40,128], index: 1, kind: input, shape index: {}]   ;;  %s649_s2 = inlined_call_operand.hbm [shape: f32[40,128], index: 2, kind: input, shape index: {}]   ;;  %s650_s3 = inlined_call_operand.hbm [shape: f32[1,1,128], index: 3, kind: output, shape index: {}]  }
   0x1   :  { %9 = vsyncpa [#allocation6], 0  ;;  %s26_s14 = sshll.u32 %s648_s1, 4  ;;  %s27_s14 = int_to_ptr.hbm [resolvable:$true] %s26_s14 }
   0x2   :  { %10 = vsyncpa [#allocation4], 0  ;;  %s489_s15 = smov [#allocation5]   ;;  %s16_s19 = sshll.u32 %s647_s0, 4  ;;  %s17_s19 = int_to_ptr.hbm [resolvable:$true] %s16_s19 }
   0x3   :  { %s28_s16 = sshll.u32 %s489_s15, 4  ;;  %s490_s20 = smov 128   ;;  %s29_s16 = int_to_ptr.vmem [resolvable:$true] %s28_s16 }
   0x4   :  { %s491_s21 = smov 8   ;;  %s492_s22 = smov [#allocation2]  }
   0x5   :  { %34 = dma.hbm_to_vmem [thread:$0]  %s27_s14, 640, %s29_s16, [#allocation6], %s490_s20, %s490_s20, %s491_s21  }
   0x6   :  { %s18_s23 = sshll.u32 %s492_s22, 4  ;;  %s39_s26 = sshll.u32 %s649_s2, 4  ;;  %s19_s23 = int_to_ptr.vmem [resolvable:$true] %s18_s23  ;;  %s40_s26 = int_to_ptr.hbm [resolvable:$true] %s39_s26 }
   0x7   :  { %21 = dma.hbm_to_vmem [thread:$0]  %s17_s19, 32, %s19_s23, [#allocation3]  }
   0x8   :  { %s493_s1 = smov [#allocation7]  }
   0x9   :  { %s41_s27 = sshll.u32 %s493_s1, 4  ;;  %s42_s27 = int_to_ptr.vmem [resolvable:$true] %s41_s27 }
   0xa   :  { %47 = dma.hbm_to_vmem [thread:$0]  %s40_s26, 640, %s42_s27, [#allocation6], %s490_s20, %s490_s20, %s491_s21  }
   0xb   :  { %483 = dma.done.wait [#allocation3], 32  }
   0xc   :  { %484 = vsyncadd [#allocation3], 4294967264 }
   0xd   :  { %485 = dma.done.wait [#allocation6], 1280  }
   0xe   :  { %486 = vsyncadd [#allocation6], 4294966016  ;;  %v61_v0 = vlaneseq  ;;  %v60_v4 = vld [vmem:[#allocation2] sm:$0x3]  ;;  %v494_v9 = vmov 1.0   ;;  %v176_v21 = vld [vmem:[#allocation5] sm:$0xff] }
   0xf   :  { %v529_v5 = vperm.slane %v60_v4, 0  ;;  %v531_v6 = vperm.slane %v60_v4, 1  ;;  %v178_v22 = vld [vmem:[#allocation5 + $0x10] sm:$0xff]  ;;  %v213_v23 = vld [vmem:[#allocation7] sm:$0xff]  ;;  %v216_v24 = vld [vmem:[#allocation7 + $0x18] sm:$0xff]  ;;  %s495_s0 = smov [#allocation8]  }
  0x10   :  { %v525_v1 = vshrl.u32 %v61_v0, 7  ;;  %v177_v25 = vld [vmem:[#allocation5 + $0x8] sm:$0xff]  ;;  %v179_v26 = vld [vmem:[#allocation5 + $0x18] sm:$0xff]  ;;  %v214_v27 = vld [vmem:[#allocation7 + $0x8] sm:$0xff]  ;;  %s271_s2 = sshll.u32 %s495_s0, 4  ;;  %s273_s30 = sshll.u32 %s650_s3, 4  ;;  %s272_s2 = int_to_ptr.vmem [resolvable:$true] %s271_s2  ;;  %s274_s30 = int_to_ptr.hbm [resolvable:$true] %s273_s30 }
  0x11   :  { %v217_v28 = vld [vmem:[#allocation7 + $0x20] sm:$0xff]  ;;  %v180_v29 = vld [vmem:[#allocation5 + $0x20] sm:$0xff]  ;;  %v215_v30 = vld [vmem:[#allocation7 + $0x10] sm:$0xff] }
  0x12   :  { %v77_v2 = vadd.s32 120, %v525_v1  ;;  %v76_v3 = vadd.s32 112, %v525_v1  ;;  %v75_v7 = vadd.s32 104, %v525_v1  ;;  %v74_v8 = vadd.s32 96, %v525_v1 }
  0x13   :  { %v73_v10 = vadd.s32 88, %v525_v1  ;;  %v72_v11 = vadd.s32 80, %v525_v1  ;;  %v71_v12 = vadd.s32 72, %v525_v1  ;;  %v70_v13 = vadd.s32 64, %v525_v1 }
  0x14   :  { %vm94_vm0 = vcmp.eq.s32.totalorder %v77_v2, %v529_v5  ;;  %vm143_vm1 = vcmp.eq.s32.totalorder %v77_v2, %v531_v6  ;;  %vm93_vm2 = vcmp.eq.s32.totalorder %v76_v3, %v529_v5  ;;  %vm142_vm3 = vcmp.eq.s32.totalorder %v76_v3, %v531_v6 }
  0x15   :  { %316 = vmatpush.msk.msra.mxu0 %vm94_vm0, %v494_v9  ;;  %348 = vmatpush.msk.msra.mxu2 %vm94_vm0, %v494_v9  ;;  %vm92_vm4 = vcmp.eq.s32.totalorder %v75_v7, %v529_v5  ;;  %vm141_vm5 = vcmp.eq.s32.totalorder %v75_v7, %v531_v6  ;;  %vm91_vm6 = vcmp.eq.s32.totalorder %v74_v8, %v529_v5  ;;  %v69_v14 = vadd.s32 56, %v525_v1 }
  0x16   :  { %332 = vmatpush.msk.msra.mxu1 %vm143_vm1, %v494_v9  ;;  %364 = vmatpush.msk.msra.mxu3 %vm143_vm1, %v494_v9  ;;  %vm140_vm7 = vcmp.eq.s32.totalorder %v74_v8, %v531_v6  ;;  %vm90_vm8 = vcmp.eq.s32.totalorder %v73_v10, %v529_v5  ;;  %vm139_vm9 = vcmp.eq.s32.totalorder %v73_v10, %v531_v6  ;;  %v68_v15 = vadd.s32 48, %v525_v1 }
  0x17   :  { %317 = vmatpush.msk.msra.mxu0 %vm93_vm2, %v494_v9  ;;  %349 = vmatpush.msk.msra.mxu2 %vm93_vm2, %v494_v9  ;;  %vm89_vm10 = vcmp.eq.s32.totalorder %v72_v11, %v529_v5  ;;  %vm138_vm11 = vcmp.eq.s32.totalorder %v72_v11, %v531_v6  ;;  %vm88_vm12 = vcmp.eq.s32.totalorder %v71_v12, %v529_v5  ;;  %v67_v16 = vadd.s32 40, %v525_v1 }
  0x18   :  { %333 = vmatpush.msk.msra.mxu1 %vm142_vm3, %v494_v9  ;;  %365 = vmatpush.msk.msra.mxu3 %vm142_vm3, %v494_v9  ;;  %vm137_vm13 = vcmp.eq.s32.totalorder %v71_v12, %v531_v6  ;;  %vm87_vm14 = vcmp.eq.s32.totalorder %v70_v13, %v529_v5  ;;  %vm136_vm15 = vcmp.eq.s32.totalorder %v70_v13, %v531_v6  ;;  %v66_v17 = vadd.s32 32, %v525_v1 }
  0x19   :  { %318 = vmatpush.msk.msra.mxu0 %vm92_vm4, %v494_v9  ;;  %350 = vmatpush.msk.msra.mxu2 %vm92_vm4, %v494_v9  ;;  %vm86_vm0 = vcmp.eq.s32.totalorder %v69_v14, %v529_v5  ;;  %vm135_vm1 = vcmp.eq.s32.totalorder %v69_v14, %v531_v6  ;;  %vm85_vm2 = vcmp.eq.s32.totalorder %v68_v15, %v529_v5  ;;  %v65_v18 = vadd.s32 24, %v525_v1 }
  0x1a   :  { %334 = vmatpush.msk.msra.mxu1 %vm141_vm5, %v494_v9  ;;  %366 = vmatpush.msk.msra.mxu3 %vm141_vm5, %v494_v9  ;;  %vm134_vm3 = vcmp.eq.s32.totalorder %v68_v15, %v531_v6  ;;  %vm84_vm4 = vcmp.eq.s32.totalorder %v67_v16, %v529_v5  ;;  %vm133_vm5 = vcmp.eq.s32.totalorder %v67_v16, %v531_v6  ;;  %v64_v19 = vadd.s32 16, %v525_v1 }
  0x1b   :  { %319 = vmatpush.msk.msra.mxu0 %vm91_vm6, %v494_v9  ;;  %351 = vmatpush.msk.msra.mxu2 %vm91_vm6, %v494_v9  ;;  %vm83_vm6 = vcmp.eq.s32.totalorder %v66_v17, %v529_v5  ;;  %v63_v20 = vadd.s32 8, %v525_v1 }
  0x1c   :  { %335 = vmatpush.msk.msra.mxu1 %vm140_vm7, %v494_v9  ;;  %367 = vmatpush.msk.msra.mxu3 %vm140_vm7, %v494_v9  ;;  %vm132_vm7 = vcmp.eq.s32.totalorder %v66_v17, %v531_v6 }
  0x1d   :  { %320 = vmatpush.msk.msra.mxu0 %vm90_vm8, %v494_v9  ;;  %352 = vmatpush.msk.msra.mxu2 %vm90_vm8, %v494_v9  ;;  %vm82_vm8 = vcmp.eq.s32.totalorder %v65_v18, %v529_v5 }
  0x1e   :  { %336 = vmatpush.msk.msra.mxu1 %vm139_vm9, %v494_v9  ;;  %368 = vmatpush.msk.msra.mxu3 %vm139_vm9, %v494_v9  ;;  %vm131_vm9 = vcmp.eq.s32.totalorder %v65_v18, %v531_v6 }
  0x1f   :  { %321 = vmatpush.msk.msra.mxu0 %vm89_vm10, %v494_v9  ;;  %353 = vmatpush.msk.msra.mxu2 %vm89_vm10, %v494_v9  ;;  %vm81_vm10 = vcmp.eq.s32.totalorder %v64_v19, %v529_v5 }
  0x20   :  { %337 = vmatpush.msk.msra.mxu1 %vm138_vm11, %v494_v9  ;;  %369 = vmatpush.msk.msra.mxu3 %vm138_vm11, %v494_v9  ;;  %vm130_vm11 = vcmp.eq.s32.totalorder %v64_v19, %v531_v6 }
  0x21   :  { %322 = vmatpush.msk.msra.mxu0 %vm88_vm12, %v494_v9  ;;  %354 = vmatpush.msk.msra.mxu2 %vm88_vm12, %v494_v9  ;;  %vm80_vm12 = vcmp.eq.s32.totalorder %v63_v20, %v529_v5 }
  0x22   :  { %338 = vmatpush.msk.msra.mxu1 %vm137_vm13, %v494_v9  ;;  %370 = vmatpush.msk.msra.mxu3 %vm137_vm13, %v494_v9  ;;  %vm129_vm13 = vcmp.eq.s32.totalorder %v63_v20, %v531_v6 }
  0x23   :  { %323 = vmatpush.msk.msra.mxu0 %vm87_vm14, %v494_v9  ;;  %355 = vmatpush.msk.msra.mxu2 %vm87_vm14, %v494_v9  ;;  %vm79_vm14 = vcmp.eq.s32.totalorder %v525_v1, %v529_v5 }
  0x24   :  { %339 = vmatpush.msk.msra.mxu1 %vm136_vm15, %v494_v9  ;;  %371 = vmatpush.msk.msra.mxu3 %vm136_vm15, %v494_v9  ;;  %vm128_vm15 = vcmp.eq.s32.totalorder %v525_v1, %v531_v6 }
  0x25   :  { %324 = vmatpush.msk.msra.mxu0 %vm86_vm0, %v494_v9  ;;  %356 = vmatpush.msk.msra.mxu2 %vm86_vm0, %v494_v9 }
  0x26   :  { %340 = vmatpush.msk.msra.mxu1 %vm135_vm1, %v494_v9  ;;  %372 = vmatpush.msk.msra.mxu3 %vm135_vm1, %v494_v9 }
  0x27   :  { %325 = vmatpush.msk.msra.mxu0 %vm85_vm2, %v494_v9  ;;  %357 = vmatpush.msk.msra.mxu2 %vm85_vm2, %v494_v9 }
  0x28   :  { %341 = vmatpush.msk.msra.mxu1 %vm134_vm3, %v494_v9  ;;  %373 = vmatpush.msk.msra.mxu3 %vm134_vm3, %v494_v9 }
  0x29   :  { %326 = vmatpush.msk.msra.mxu0 %vm84_vm4, %v494_v9  ;;  %358 = vmatpush.msk.msra.mxu2 %vm84_vm4, %v494_v9 }
  0x2a   :  { %342 = vmatpush.msk.msra.mxu1 %vm133_vm5, %v494_v9  ;;  %374 = vmatpush.msk.msra.mxu3 %vm133_vm5, %v494_v9 }
  0x2b   :  { %327 = vmatpush.msk.msra.mxu0 %vm83_vm6, %v494_v9  ;;  %359 = vmatpush.msk.msra.mxu2 %vm83_vm6, %v494_v9 }
  0x2c   :  { %343 = vmatpush.msk.msra.mxu1 %vm132_vm7, %v494_v9  ;;  %375 = vmatpush.msk.msra.mxu3 %vm132_vm7, %v494_v9 }
  0x2d   :  { %328 = vmatpush.msk.msra.mxu0 %vm82_vm8, %v494_v9  ;;  %360 = vmatpush.msk.msra.mxu2 %vm82_vm8, %v494_v9 }
  0x2e   :  { %344 = vmatpush.msk.msra.mxu1 %vm131_vm9, %v494_v9  ;;  %376 = vmatpush.msk.msra.mxu3 %vm131_vm9, %v494_v9 }
  0x2f   :  { %329 = vmatpush.msk.msra.mxu0 %vm81_vm10, %v494_v9  ;;  %361 = vmatpush.msk.msra.mxu2 %vm81_vm10, %v494_v9 }
  0x30   :  { %345 = vmatpush.msk.msra.mxu1 %vm130_vm11, %v494_v9  ;;  %377 = vmatpush.msk.msra.mxu3 %vm130_vm11, %v494_v9 }
  0x31   :  { %330 = vmatpush.msk.msra.mxu0 %vm80_vm12, %v494_v9  ;;  %362 = vmatpush.msk.msra.mxu2 %vm80_vm12, %v494_v9 }
  0x32   :  { %346 = vmatpush.msk.msra.mxu1 %vm129_vm13, %v494_v9  ;;  %378 = vmatpush.msk.msra.mxu3 %vm129_vm13, %v494_v9 }
  0x33   :  { %331 = vmatpush.msk.msra.mxu0 %vm79_vm14, %v494_v9  ;;  %363 = vmatpush.msk.msra.mxu2 %vm79_vm14, %v494_v9 }
  0x34   :  { %347 = vmatpush.msk.msra.mxu1 %vm128_vm15, %v494_v9  ;;  %197 = vmatmul.f32.vlgmr.msra.gmra.mxu0 %v176_v21 }
  0x35   :  { %203 = vmatmul.f32.vlgmr.msra.gmra.mxu2 %v178_v22  ;;  %234 = vmatmul.f32.vlgmr.msra.gmra.mxu1 %v213_v23 }
  0x36   :  { %379 = vmatpush.msk.msra.mxu3 %vm128_vm15, %v494_v9 }
  0x37   :  { %243 = vmatmul.f32.vlgmr.msra.gmra.mxu3 %v216_v24 }
  0x3c   :  { %200 = vmatmul.f32.gmra.mxu0 %v177_v25 }
  0x3d   :  { %206 = vmatmul.f32.gmra.mxu2 %v179_v26  ;;  %237 = vmatmul.f32.gmra.mxu1 %v214_v27 }
  0x3f   :  { %246 = vmatmul.f32.gmra.mxu3 %v217_v28 }
  0x45   :  { %209 = vmatmul.f32.gmra.mxu2 %v180_v29  ;;  %240 = vmatmul.f32.gmra.mxu1 %v215_v30 }
  0xb1   :  { %v198_v31 = vpop.f32.mrf.mxu0 }
  0xb2   :  { %v235_v32 = vpop.f32.mrf.mxu1 }
  0xb3   :  { %v250_v39 = vmul.f32 %v235_v32, %v198_v31 }
  0xb8   :  { %v204_v33 = vpop.f32.mrf.mxu2 }
  0xb9   :  { %v201_v35 = vpop.f32.mrf.mxu0 }
  0xba   :  { %v238_v34 = vpop.f32.mrf.mxu1  ;;  %v244_v36 = vpop.f32.mrf.mxu3 }
  0xbb   :  { %v251_v37 = vmul.f32 %v238_v34, %v201_v35 }
  0xbd   :  { %v255_v41 = vadd.f32 %v251_v37, %v250_v39 }
  0xc0   :  { %v207_v38 = vpop.f32.mrf.mxu2 }
  0xc1   :  { %v253_v45 = vmul.f32 %v244_v36, %v207_v38 }
  0xc2   :  { %v241_v40 = vpop.f32.mrf.mxu1  ;;  %v247_v44 = vpop.f32.mrf.mxu3 }
  0xc3   :  { %v252_v42 = vmul.f32 %v241_v40, %v204_v33 }
  0xc5   :  { %v256_v43 = vadd.f32 %v255_v41, %v252_v42 }
  0xc7   :  { %v257_v48 = vadd.f32 %v256_v43, %v253_v45 }
  0xc8   :  { %v210_v46 = vpop.f32.mrf.mxu2 }
  0xc9   :  { %v254_v47 = vmul.f32 %v247_v44, %v210_v46 }
  0xcb   :  { %v258_v49 = vadd.f32 %v257_v48, %v254_v47 }
  0xcd   :  { %v259_v50 = vrot.slane %v258_v49, 4 }
  0xcf   :  { %v260_v51 = vadd.f32 %v259_v50, %v258_v49 }
  0xd1   :  { %v261_v52 = vrot.slane %v260_v51, 2 }
  0xd3   :  { %v262_v53 = vadd.f32 %v261_v52, %v260_v51 }
  0xd5   :  { %v263_v54 = vrot.slane %v262_v53, 1 }
  0xd7   :  { %v264_v55 = vadd.f32 %v263_v54, %v262_v53 }
  0xd9   :  { %265 = vst [vmem:[#allocation8] sm:$0x1] %v264_v55 }
  0xda   :  { %276 = dma.vmem_to_hbm [thread:$0]  %s272_s2, 16, %s274_s30, [#allocation4]  }
  0xdb   :  { %487 = dma.done.wait [#allocation4], 16  }
  0xdc   :  { %488 = vsyncadd [#allocation4], 4294967280 }
  0xdd   :  { %281 = vsyncpa [#allocation3], 1 }
  0xde   :  { %282 = vsyncpa [#allocation6], 1 }
  0xdf   :  { %283 = vsyncpa [#allocation4], 1 }

</bundles_post_ra>
